<compile_context>
chip_gen: v7x
topology: tpu7x:2x2x1
jax: 0.10.0
libtpu: 0.0.40
codegen_flags: <defaults>
</compile_context>

<pallas_src>
import jax
import jax.numpy as jnp
from jax import lax
from jax.experimental import pallas as pl
from jax.experimental.pallas import tpu as pltpu


def _probe_kernel(x_ref, w_ref, b_ref, o_ref):
    # x_ref: (TB, D) VMEM (input dtype, streamed, fed straight to the MXU)
    # w_ref: (1, D)  VMEM (same dtype as x, resident)
    # b_ref: (1,)    SMEM f32 scalar
    # o_ref: (1, TB) VMEM (lane-dense output row)
    y = lax.dot_general(
        w_ref[...], x_ref[...],
        dimension_numbers=(((1,), (1,)), ((), ())),   # contract over D; no x transpose
        preferred_element_type=jnp.float32,
    )
    o_ref[...] = (y + b_ref[0]).astype(o_ref.dtype)


def _round_up(n, m):
    return ((n + m - 1) // m) * m


def regressor_probe_forward(x, weight, bias, *, tile_b=None):
    """x: (B, D); weight: (1, D); bias: (1,) -> returns (B,) in x.dtype."""
    B, D = x.shape
    itemsize = jnp.dtype(x.dtype).itemsize
    d_lanes = _round_up(D, 128)           # physical lane footprint of one row in VMEM

    # ---- chip-aware per-pipeline-buffer budget for the streamed x tile.
    try:
        vmem_cap = pltpu.get_tpu_info().vmem_capacity_bytes
    except Exception:
        vmem_cap = 64 * 1024 * 1024       # conservative fallback (v7x-sized)
    small_vmem = vmem_cap <= 64 * 1024 * 1024
    per_buf_budget = (12 if small_vmem else 24) * 1024 * 1024

    # ---- tile sizing: largest 128-multiple batch tile fitting the budget.
    if tile_b is None:
        max_rows = per_buf_budget // (d_lanes * itemsize)
        tile_b = max(128, (max_rows // 128) * 128)
        tile_b = min(tile_b, _round_up(B, 128))          # don't over-tile tiny batches
        if B >= 256:
            # Keep >= 2 grid steps: pipeline overlap + both TCs on v7x megacore.
            tile_b = min(tile_b, _round_up((B + 1) // 2, 128))
    assert tile_b % 128 == 0, "tile_b must be a multiple of 128 (lane width)"

    # ---- grid covers B with a partial last block (no input padding / copy).
    n_tiles = pl.cdiv(B, tile_b)

    w2d = weight.reshape(1, D).astype(x.dtype)   # cast once; MXU gets native dtype
    b1d = bias.reshape(1).astype(jnp.float32)

    # ---- scoped-VMEM request (lane/sublane-padded accounting + headroom),
    #      kept well under the physical per-TC ceiling (64 MiB on v7x).
    x_bytes = 2 * tile_b * d_lanes * itemsize                     # double-buffered x
    w_bytes = 2 * 8 * d_lanes * itemsize                          # (1,D) -> 8 sublanes
    o_bytes = 2 * 8 * _round_up(tile_b, 128) * itemsize           # (1,TB) -> 8 sublanes
    vmem_ceiling = (56 if small_vmem else 100) * 1024 * 1024
    vmem_limit = min(vmem_ceiling,
                     max(32 * 1024 * 1024,
                         x_bytes + w_bytes + o_bytes + (4 << 20)))

    out = pl.pallas_call(
        _probe_kernel,
        out_shape=jax.ShapeDtypeStruct((1, B), x.dtype),
        grid=(n_tiles,),
        in_specs=[
            pl.BlockSpec((tile_b, D), lambda i: (i, 0)),            # streamed x tile
            pl.BlockSpec((1, D), lambda i: (0, 0)),                 # weight (resident)
            pl.BlockSpec(memory_space=pltpu.MemorySpace.SMEM),      # bias scalar
        ],
        out_specs=pl.BlockSpec((1, tile_b), lambda i: (0, i)),      # lane-dense out
        compiler_params=pltpu.CompilerParams(
            dimension_semantics=("parallel",),
            vmem_limit_bytes=vmem_limit,
        ),
    )(x, w2d, b1d)

    # squeeze(-1) — glue, plain JAX
    return out[0]


if __name__ == "__main__":
    # Deterministic parameter init (synthetic; mimics nn.Linear(input_dim, 1))
    input_dim = 32
    batch = 16
    bias_init = 0.5  # exercise the non-zero bias_init branch

    key = jax.random.PRNGKey(0)
    kx, kw = jax.random.split(key)
    x = jax.random.normal(kx, (batch, input_dim), dtype=jnp.float32)

    bound = 1.0 / (input_dim ** 0.5)
    weight = jax.random.uniform(kw, (1, input_dim), dtype=jnp.float32,
                                minval=-bound, maxval=bound)
    bias = jnp.full((1,), bias_init, dtype=jnp.float32)

    y = jax.block_until_ready(regressor_probe_forward(x, weight, bias))
    y_ref = (x @ weight.T + bias)[:, 0]
    assert y.shape == (batch,)
    assert jnp.allclose(y, y_ref, atol=1e-5, rtol=1e-5)

    # Non-divisible, multi-tile batch: exercises the partial-last-block path
    # (previously handled by a jnp.pad copy, now pad-free).
    batch2 = 300
    x2 = jax.random.normal(jax.random.PRNGKey(1), (batch2, input_dim), jnp.float32)
    y2 = jax.block_until_ready(regressor_probe_forward(x2, weight, bias, tile_b=128))
    y2_ref = (x2 @ weight.T + bias)[:, 0]
    assert y2.shape == (batch2,)
    assert jnp.allclose(y2, y2_ref, atol=1e-5, rtol=1e-5)

    # bf16 input path: weight is cast to bf16 in the wrapper, MXU fed natively,
    # f32 accumulation via preferred_element_type.
    x3 = x2.astype(jnp.bfloat16)
    y3 = jax.block_until_ready(regressor_probe_forward(x3, weight, bias, tile_b=128))
    y3_ref = (x3.astype(jnp.float32) @ weight.T + bias)[:, 0]
    assert y3.shape == (batch2,)
    assert jnp.allclose(y3.astype(jnp.float32), y3_ref, atol=5e-2, rtol=5e-2)

    print("KERNEL_OK")
</pallas_src>

<mosaic_0001>
module attributes {stable_mosaic.version = 11 : i64} {
  func.func @_probe_kernel(%arg0: i32, %arg1: memref<128x32xf32, #tpu.memory_space<vmem>>, %arg2: memref<1x32xf32, #tpu.memory_space<vmem>>, %arg3: memref<1xf32, #tpu.memory_space<smem>>, %arg4: memref<1x128xf32, #tpu.memory_space<vmem>>) attributes {dimension_semantics = [#tpu.dimension_semantics<parallel>], iteration_bounds = array<i64: 1>, scalar_prefetch = 0 : i64, scratch_operands = 0 : i64, tpu.core_type = #tpu.core_type<tc>, window_params = [{transform_indices = @transform_0, window_bounds = array<i64: 128, 32>}, {pipeline_mode = #tpu.pipeline_mode<synchronous>, transform_indices = @transform_1, window_bounds = array<i64: 1, 32>}, {transform_indices = @transform_2, window_bounds = array<i64: 1>}, {transform_indices = @transform_3, window_bounds = array<i64: 1, 128>}]} {
    %c0 = arith.constant 0 : index
    %c0_0 = arith.constant 0 : index
    %0 = vector.load %arg2[%c0, %c0_0] : memref<1x32xf32, #tpu.memory_space<vmem>>, vector<1x32xf32>
    %c0_1 = arith.constant 0 : index
    %c0_2 = arith.constant 0 : index
    %1 = vector.load %arg1[%c0_1, %c0_2] : memref<128x32xf32, #tpu.memory_space<vmem>>, vector<128x32xf32>
    %cst = arith.constant dense<0.000000e+00> : vector<1x128xf32>
    %2 = tpu.matmul %0, %1, %cst {dimension_numbers = #tpu.dot_dimension_numbers<[1], [1], [0], [0], [0, 0, 1, 0], [], []>} : vector<1x32xf32>, vector<128x32xf32>, vector<1x128xf32> -> vector<1x128xf32>
    %c0_3 = arith.constant 0 : index
    %3 = memref.load %arg3[%c0_3] : memref<1xf32, #tpu.memory_space<smem>>
    %4 = vector.broadcast %3 : f32 to vector<1x128xf32>
    %5 = arith.addf %2, %4 : vector<1x128xf32>
    %c0_4 = arith.constant 0 : index
    %c0_5 = arith.constant 0 : index
    %6 = vector.load %arg4[%c0_4, %c0_5] : memref<1x128xf32, #tpu.memory_space<vmem>>, vector<1x128xf32>
    tpu.vector_store %arg4[%c0_4, %c0_5], %5 {strides = array<i32>} : memref<1x128xf32, #tpu.memory_space<vmem>>, vector<1x128xf32>,
    return
  }
  func.func @transform_0(%arg0: i32) -> (i32, i32) {
    %c0_i32 = arith.constant 0 : i32
    %c0_i32_0 = arith.constant 0 : i32
    return %arg0, %c0_i32 : i32, i32
  }
  func.func @transform_1(%arg0: i32) -> (i32, i32) {
    %c0_i32 = arith.constant 0 : i32
    %c0_i32_0 = arith.constant 0 : i32
    %c0_i32_1 = arith.constant 0 : i32
    return %c0_i32, %c0_i32_0 : i32, i32
  }
  func.func @transform_2(%arg0: i32) -> i32 {
    %c0_i32 = arith.constant 0 : i32
    %c0_i32_0 = arith.constant 0 : i32
    return %c0_i32 : i32
  }
  func.func @transform_3(%arg0: i32) -> (i32, i32) {
    %c0_i32 = arith.constant 0 : i32
    %c0_i32_0 = arith.constant 0 : i32
    return %c0_i32, %arg0 : i32, i32
  }
}

</mosaic_0001>

<bundles_post_ra>
// kernel: tpu_custom_call.1
= control target key start
LH: loop header
LB: loop body
LE: loop exit
PB: predicated region body
PF: predicated region fallthrough
CT: control target
= control target key end

     0   :  { %9 = vsyncpa [#allocation4], 0  ;;  %s423_s0 = inlined_call_operand.hbm [shape: f32[16,32], index: 0, kind: input, shape index: {}]   ;;  %s424_s1 = inlined_call_operand.vmem [shape: f32[1,32], index: 1, kind: input, shape index: {}]   ;;  %s425_s2 = inlined_call_operand.<no memory space> [shape: f32[1], index: 2, kind: input, shape index: {}]   ;;  %s426_s3 = inlined_call_operand.hbm [shape: f32[1,16], index: 3, kind: output, shape index: {}]  }
   0x1   :  { %10 = vsyncpa [#allocation5], 0 }
   0x2   :  { %15 = vsyncadd [#allocation4], 1792  ;;  %s343_s12 = smov [#allocation3]   ;;  %s295_s16 = scalar_lea.hbm %s423_s0, 256 }
   0x3   :  { %s16_s13 = sshll.u32 %s343_s12, 4  ;;  %p296_p0 = scmp.ne.s32.totalorder %s423_s0, %s295_s16  ;;  %s17_s13 = int_to_ptr.vmem [resolvable:$true] %s16_s13 }
   0x4   :  { %p299_p1 = scmp.lt.u32.totalorder %s295_s16, %s423_s0 }
   0x6   :  { %p301_p2 = pnand %p299_p1, %p296_p0 }
   0x8   :  { %304 = shalt.err (!%p301_p2)
}
   0x9   :  { %s305_s21 = scalar_lea.vmem %s17_s13, 256  ;;  %s309_s22 = scalar_lea.vmem %s17_s13, 2048 }
   0xa   :  { %p306_p3 = scmp.ne.s32.totalorder %s17_s13, %s305_s21  ;;  %p310_p4 = scmp.lt.s32.totalorder %s17_s13, %s17_s13 }
   0xb   :  { %p311_p5 = scmp.lt.s32.totalorder %s309_s22, %s305_s21 }
   0xd   :  { %p312_p6 = por %p311_p5, %p310_p4 }
   0xf   :  { %p313_p7 = pnand %p312_p6, %p306_p3 }
  0x11   :  { %316 = shalt.err (!%p313_p7)
}
  0x12   :  { %s344_s23 = smov 128   ;;  %s345_s24 = smov 8  }
  0x13   :  { %22 = dma.hbm_to_vmem [thread:$0]  %s423_s0, 256, %s17_s13, [#allocation4], %s344_s23, %s344_s23, %s345_s24  }
  0x14   :  { %339 = dma.done.wait [#allocation4], 2048  }
  0x15   :  { %340 = vsyncadd [#allocation4], 4294965248  ;;  %v346_v0 = vmov 0.0|0.0   ;;  %vm347_vm0 = vmmov 0   ;;  %v348_v1 = vmov 0.0   ;;  %vm49_vm1 = vcmask 261120  }
  0x16   :  { %256 = vmatprep.subr.bf16.mxu0 %v346_v0  ;;  %253 = vmatprep.mubr.msk.f32.mxu0 %vm347_vm0, %v348_v1  ;;  %v31_v2 = vld [vmem:[#allocation3] sm:$0xff]  ;;  %v32_v3 = vld [vmem:[#allocation3 + $0x8] sm:$0xff]  ;;  %vm384_vm2 = vmpackc.low %vm49_vm1, %vm49_vm1  ;;  %v48_v28 = vstv %s425_s2  ;;  %s349_s30 = smov [#allocation6]  }
  0x17   :  { %v257_v5 = vpack.c.bf16 %v32_v3, %v31_v2  ;;  %v33_v6 = vld [vmem:[#allocation3 + $0x10] sm:$0xff]  ;;  %v34_v7 = vld [vmem:[#allocation3 + $0x18] sm:$0xff]  ;;  %v35_v9 = vld [vmem:[#allocation3 + $0x20] sm:$0xff]  ;;  %s178_s4 = sshll.u32 %s349_s30, 4  ;;  %s179_s4 = int_to_ptr.vmem [resolvable:$true] %s178_s4 }
  0x18   :  { %v261_v8 = vpack.c.bf16 %v34_v7, %v33_v6  ;;  %v36_v10 = vld [vmem:[#allocation3 + $0x28] sm:$0xff]  ;;  %v37_v12 = vld [vmem:[#allocation3 + $0x30] sm:$0xff]  ;;  %v38_v13 = vld [vmem:[#allocation3 + $0x38] sm:$0xff]  ;;  %s317_s5 = scalar_lea.vmem %s179_s4, 16  ;;  %s321_s6 = scalar_lea.vmem %s179_s4, 32 }
  0x19   :  { %259 = vmatpush3.bf16.xpose.msk.msra.mxu0 %vm384_vm2, %v257_v5  ;;  %v265_v11 = vpack.c.bf16 %v36_v10, %v35_v9  ;;  %v269_v14 = vpack.c.bf16 %v38_v13, %v37_v12  ;;  %v39_v15 = vld [vmem:[#allocation3 + $0x40] sm:$0xff]  ;;  %v40_v16 = vld [vmem:[#allocation3 + $0x48] sm:$0xff]  ;;  %v41_v18 = vld [vmem:[#allocation3 + $0x50] sm:$0xff]  ;;  %p318_p8 = scmp.ne.s32.totalorder %s179_s4, %s317_s5  ;;  %p322_p9 = scmp.lt.s32.totalorder %s179_s4, %s179_s4 }
  0x1a   :  { %260 = vmatprep.subr.bf16.mxu0 %v346_v0  ;;  %v273_v17 = vpack.c.bf16 %v40_v16, %v39_v15  ;;  %v42_v19 = vld [vmem:[#allocation3 + $0x58] sm:$0xff]  ;;  %v43_v21 = vld [vmem:[#allocation3 + $0x60] sm:$0xff]  ;;  %v44_v22 = vld [vmem:[#allocation3 + $0x68] sm:$0xff]  ;;  %p323_p10 = scmp.lt.s32.totalorder %s321_s6, %s317_s5 }
  0x1b   :  { %v277_v20 = vpack.c.bf16 %v42_v19, %v41_v18  ;;  %v281_v23 = vpack.c.bf16 %v44_v22, %v43_v21  ;;  %v45_v24 = vld [vmem:[#allocation3 + $0x70] sm:$0xff]  ;;  %v46_v25 = vld [vmem:[#allocation3 + $0x78] sm:$0xff]  ;;  %v30_v27 = vld [vmem:[%s424_s1] sm:$0x1] }
  0x1c   :  { %v285_v26 = vpack.c.bf16 %v46_v25, %v45_v24  ;;  %p324_p11 = por %p323_p10, %p322_p9 }
  0x1e   :  { %p325_p12 = pnand %p324_p11, %p318_p8 }
  0x21   :  { %263 = vmatpush3.bf16.xpose.msk.msra.mxu0 %vm384_vm2, %v261_v8 }
  0x22   :  { %264 = vmatprep.subr.bf16.mxu0 %v346_v0 }
  0x29   :  { %267 = vmatpush3.bf16.xpose.msk.msra.mxu0 %vm384_vm2, %v265_v11 }
  0x2a   :  { %268 = vmatprep.subr.bf16.mxu0 %v346_v0 }
  0x31   :  { %271 = vmatpush3.bf16.xpose.msk.msra.mxu0 %vm384_vm2, %v269_v14 }
  0x32   :  { %272 = vmatprep.subr.bf16.mxu0 %v346_v0 }
  0x39   :  { %275 = vmatpush3.bf16.xpose.msk.msra.mxu0 %vm384_vm2, %v273_v17 }
  0x3a   :  { %276 = vmatprep.subr.bf16.mxu0 %v346_v0 }
  0x41   :  { %279 = vmatpush3.bf16.xpose.msk.msra.mxu0 %vm384_vm2, %v277_v20 }
  0x42   :  { %280 = vmatprep.subr.bf16.mxu0 %v346_v0 }
  0x49   :  { %283 = vmatpush3.bf16.xpose.msk.msra.mxu0 %vm384_vm2, %v281_v23 }
  0x4a   :  { %284 = vmatprep.subr.bf16.mxu0 %v346_v0 }
  0x51   :  { %287 = vmatpush3.bf16.xpose.msk.msra.mxu0 %vm384_vm2, %v285_v26 }
  0x58   :  { %254 = vmatmul.mubr.msk.f32.vlgmr.msra.gmra.mrb[0].mxu0 %vm49_vm1, %v30_v27 }
 0x12b   :  { %v167_v29 = vpop.f32.mrb[0].mxu0 }
 0x12c   :  { %v168_v30 = vadd.f32 %v167_v29, %v48_v28  ;;  %v255_v31 = vpop.f32.mrb[1].mxu0 }
 0x12e   :  { %171 = vst [vmem:[#allocation6] sm:$0x1] %v168_v30 }
 0x12f   :  { %328 = shalt.err (!%p325_p12)
}
 0x130   :  { %s329_s8 = scalar_lea.hbm %s426_s3, 16 }
 0x131   :  { %p330_p13 = scmp.ne.s32.totalorder %s426_s3, %s329_s8  ;;  %p333_p0 = scmp.lt.u32.totalorder %s329_s8, %s426_s3 }
 0x133   :  { %p335_p1 = pnand %p333_p0, %p330_p13 }
 0x135   :  { %338 = shalt.err (!%p335_p1)
}
 0x136   :  { %181 = dma.vmem_to_hbm [thread:$0]  %s179_s4, 16, %s426_s3, [#allocation5]  }
 0x137   :  { %341 = dma.done.wait [#allocation5], 16  }
 0x138   :  { %342 = vsyncadd [#allocation5], 4294967280 }
 0x139   :  { %185 = vsyncpa [#allocation4], 1 }
 0x13a   :  { %186 = vsyncpa [#allocation5], 1 }

</bundles_post_ra>
